<compile_context>
chip_gen: v7x
topology: tpu7x:2x2x1
jax: 0.10.0
libtpu: 0.0.40
codegen_flags: <defaults>
</compile_context>

<pallas_src>
import functools
import math

import jax
import jax.numpy as jnp
from jax.experimental import pallas as pl
from jax.experimental.pallas import tpu as pltpu


def _round_up(x, m):
    return (x + m - 1) // m * m


def _tap_index(start, size, stride):
    """Static slice for the common stride-1 case, strided pl.ds otherwise."""
    if stride == 1:
        return slice(start, start + size)
    return pl.ds(start, size, stride=stride)


def _pick_row_tile(h_out, w_out, max_m):
    """Row tile TH with TH*w_out <= max_m (when possible) and (TH*w_out) % 8 == 0,
    covering H_out with a cdiv grid (partial tail tile is zero-padded)."""
    g = 8 // math.gcd(w_out, 8)                   # TH granule for sublane-aligned M
    th = max(g, (max_m // w_out) // g * g)        # largest multiple of g fitting max_m
    th = min(th, _round_up(h_out, g))             # don't overshoot H_out needlessly
    return th


# ---------------------------------------------------------------------------
# Conv kernel: one (batch, H_out row tile, C_out tile) per grid cell.
# ---------------------------------------------------------------------------
def _qconv_kernel(scale_ref, zp_ref, xw_ref, wq_ref, b_ref, o_ref, *,
                  TH, W_out, KH, KW, C_in, CO_T, stride, dilation):
    """
    scale_ref / zp_ref : SMEM (1,) f32        per-tensor quant params
    xw_ref : VMEM (1, row_span, Wp, C_in) bf16  padded-input row window (tile + halo)
    wq_ref : VMEM (KH*KW, C_in, CO_T) int8      quantized weight, this C_out tile
    b_ref  : VMEM (1, CO_T) f32                 bias, this C_out tile
    o_ref  : VMEM (1, TH*W_out, CO_T) f32       lane-dense output tile
    """
    sh, sw = stride
    dh, dw = dilation
    scale = scale_ref[0]
    zp = zp_ref[0]

    acc = jnp.zeros((TH * W_out, CO_T), jnp.float32)
    for kh in range(KH):
        for kw in range(KW):
            # Per-tap ref-level slice: stride folded into the load, no big value
            # buffer and no per-tap relayout of overlapping rows.
            x_tap = xw_ref[0,
                           _tap_index(kh * dh, TH, sh),
                           _tap_index(kw * dw, W_out, sw),
                           :]                                     # (TH, W_out, C_in) bf16
            patch = x_tap.reshape(TH * W_out, C_in)
            # In-kernel weight dequant (int8 -> bf16): VPU work that overlaps the MXU.
            w_tap = ((wq_ref[kh * KW + kw].astype(jnp.float32) - zp) * scale
                     ).astype(jnp.bfloat16)                       # (C_in, CO_T)
            acc = acc + jnp.dot(patch, w_tap, preferred_element_type=jnp.float32)

    # TODO(synk): optionally emit bf16 here to halve output writeback.
    o_ref[0] = (acc + b_ref[...]).astype(o_ref.dtype)


@functools.partial(jax.jit, static_argnames=("stride", "padding", "dilation", "groups"))
def quantized_conv2d(x_nchw, quantized_weight, bias, scale, zero_point, *,
                     stride=(1, 1), padding=(0, 0), dilation=(1, 1), groups=1):
    """Matches QuantizedConv2d.forward:
       F.conv2d(x, (q.float() - zero_point) * scale, bias, stride, padding, dilation, groups)."""
    # TODO(synk): grouped conv (groups > 1) not implemented.
    assert groups == 1
    N, C_in, H, W = x_nchw.shape
    C_out, C_in_w, KH, KW = quantized_weight.shape
    assert C_in_w == C_in
    sh, sw = stride
    ph, pw = padding
    dh, dw = dilation
    H_out = (H + 2 * ph - dh * (KH - 1) - 1) // sh + 1
    W_out = (W + 2 * pw - dw * (KW - 1) - 1) // sw + 1

    if bias is None:
        bias = jnp.zeros((C_out,), jnp.float32)
    scale_arr = jnp.asarray(scale, jnp.float32).reshape(-1)
    zp_arr = jnp.asarray(zero_point, jnp.float32).reshape(-1)
    # TODO(synk): per-channel scale/zero_point would need (C_out,)-indexed dequant.
    assert scale_arr.size == 1 and zp_arr.size == 1, "per-tensor quantization only"

    # ---- glue: NCHW -> padded NHWC, activations in bf16 (half DMA / VMEM) ----------
    x_pad = jnp.pad(jnp.transpose(x_nchw, (0, 2, 3, 1)).astype(jnp.bfloat16),
                    ((0, 0), (ph, ph), (pw, pw), (0, 0)))
    w_khwc = jnp.transpose(quantized_weight, (2, 3, 1, 0))        # (KH, KW, C_in, C_out) i8

    if C_in < 32:
        # Tiny-C_in (first conv layers): im2col in the wrapper so the kernel runs a
        # lane-dense K = round_up(KH*KW*C_in, 128) contraction instead of K = C_in.
        taps = [x_pad[:, kh * dh: kh * dh + (H_out - 1) * sh + 1: sh,
                      kw * dw: kw * dw + (W_out - 1) * sw + 1: sw, :]
                for kh in range(KH) for kw in range(KW)]
        x_eff = jnp.concatenate(taps, axis=-1)                    # (N, H_out, W_out, K) bf16
        K = KH * KW * C_in
        K_pad = _round_up(K, 128)
        x_eff = jnp.pad(x_eff, ((0, 0), (0, 0), (0, 0), (0, K_pad - K)))
        w_eff = jnp.pad(w_khwc.reshape(K, C_out),
                        ((0, K_pad - K), (0, 0))).reshape(1, K_pad, C_out)
        KH_e = KW_e = 1
        sh_e = sw_e = dh_e = dw_e = 1
        C_in_e = K_pad
    else:
        x_eff = x_pad
        w_eff = w_khwc.reshape(KH * KW, C_in, C_out)
        KH_e, KW_e = KH, KW
        sh_e, sw_e, dh_e, dw_e = sh, sw, dh, dw
        C_in_e = C_in

    Hp_e, Wp_e = x_eff.shape[1], x_eff.shape[2]

    # ---- C_out padding / tiling: lane-dense MXU feed and unmasked stores -----------
    C_out_pad = _round_up(C_out, 128)
    co_tile = 256 if (C_out_pad >= 256 and C_out_pad % 256 == 0) else 128
    n_co = C_out_pad // co_tile
    w_eff = jnp.pad(w_eff, ((0, 0), (0, 0), (0, C_out_pad - C_out)))       # int8 zeros
    b2d = jnp.pad(bias.astype(jnp.float32),
                  (0, C_out_pad - C_out)).reshape(1, C_out_pad)

    # ---- M (row) tiling: cdiv grid, accumulator bounded to the vreg budget ---------
    max_m = 256 if co_tile <= 128 else 128
    TH = _pick_row_tile(H_out, W_out, max_m)
    n_th = pl.cdiv(H_out, TH)
    H_out_pad = n_th * TH
    row_span = (TH - 1) * sh_e + (KH_e - 1) * dh_e + 1
    Hp_need = (H_out_pad - 1) * sh_e + (KH_e - 1) * dh_e + 1
    if Hp_need > Hp_e:                                            # padded tail tile rows
        x_eff = jnp.pad(x_eff, ((0, 0), (0, Hp_need - Hp_e), (0, 0), (0, 0)))

    # Overlapping row windows (tile rows + halo): each grid step DMAs exactly the rows
    # it needs; the window's block index is constant over the C_out axis so it is
    # fetched once per (batch, row tile) and reused for every C_out tile.
    row_idx = jnp.arange(n_th)[:, None] * (TH * sh_e) + jnp.arange(row_span)[None, :]
    x_win = x_eff[:, row_idx].reshape(N * n_th, row_span, Wp_e, C_in_e)

    kernel = functools.partial(
        _qconv_kernel, TH=TH, W_out=W_out, KH=KH_e, KW=KW_e, C_in=C_in_e, CO_T=co_tile,
        stride=(sh_e, sw_e), dilation=(dh_e, dw_e))

    out_flat = pl.pallas_call(
        kernel,
        out_shape=jax.ShapeDtypeStruct((N, H_out_pad * W_out, C_out_pad), jnp.float32),
        grid=(N, n_th, n_co),
        in_specs=[
            pl.BlockSpec(memory_space=pltpu.MemorySpace.SMEM),    # scale
            pl.BlockSpec(memory_space=pltpu.MemorySpace.SMEM),    # zero_point
            pl.BlockSpec((1, row_span, Wp_e, C_in_e),
                         lambda b, t, co: (b * n_th + t, 0, 0, 0)),
            pl.BlockSpec((KH_e * KW_e, C_in_e, co_tile), lambda b, t, co: (0, 0, co)),
            pl.BlockSpec((1, co_tile), lambda b, t, co: (0, co)),
        ],
        out_specs=pl.BlockSpec((1, TH * W_out, co_tile), lambda b, t, co: (b, t, co)),
        compiler_params=pltpu.CompilerParams(
            dimension_semantics=("parallel", "parallel", "parallel"),
            # 48 MiB: headroom below v7x's 64 MiB/core; far more than these blocks need.
            vmem_limit_bytes=48 * 1024 * 1024,
        ),
    )(scale_arr, zp_arr, x_win, w_eff, b2d)

    # Free metadata reshape, strip padded rows/channels, NHWC -> NCHW.
    out = out_flat.reshape(N, H_out_pad, W_out, C_out_pad)[:, :H_out, :, :C_out]
    return jnp.transpose(out, (0, 3, 1, 2))


if __name__ == "__main__":
    def run_case(key, N, C_in, H, W, C_out, KH, KW, stride, padding, dilation):
        kx, kw_, kb = jax.random.split(key, 3)
        x = jax.random.normal(kx, (N, C_in, H, W), dtype=jnp.float32)
        qw = jax.random.randint(kw_, (C_out, C_in, KH, KW), -128, 128,
                                dtype=jnp.int32).astype(jnp.int8)
        b = jax.random.normal(kb, (C_out,), dtype=jnp.float32)
        scale, zero_point = 0.02, 3.0

        out = quantized_conv2d(x, qw, b, scale, zero_point, stride=stride,
                               padding=padding, dilation=dilation, groups=1)
        out = jax.block_until_ready(out)

        # Reference with bf16-rounded operands (kernel feeds the MXU bf16 with f32 acc).
        dq_w = ((qw.astype(jnp.float32) - zero_point) * scale)
        dq_w = dq_w.astype(jnp.bfloat16).astype(jnp.float32)
        x_bf = x.astype(jnp.bfloat16).astype(jnp.float32)
        ref = jax.lax.conv_general_dilated(
            x_bf, dq_w, window_strides=stride,
            padding=((padding[0], padding[0]), (padding[1], padding[1])),
            rhs_dilation=dilation,
            dimension_numbers=("NCHW", "OIHW", "NCHW"),
            precision=jax.lax.Precision.HIGHEST,
        ) + b.reshape(1, C_out, 1, 1)

        assert out.shape == ref.shape, (out.shape, ref.shape)
        max_err = float(jnp.max(jnp.abs(out - ref)))
        assert jnp.allclose(out, ref, atol=2e-2, rtol=2e-2), max_err

    root = jax.random.PRNGKey(0)
    k1, k2, k3 = jax.random.split(root, 3)

    # Tiny-C_in first-layer conv: exercises the im2col repack path and 4 row tiles.
    run_case(k1, N=2, C_in=4, H=32, W=32, C_out=8, KH=3, KW=3,
             stride=(1, 1), padding=(1, 1), dilation=(1, 1))
    # 128-channel conv with non-divisible H_out and C_out < 128: exercises the
    # cdiv/partial-tail row tiling plus C_out padding + output channel slicing.
    run_case(k2, N=1, C_in=128, H=20, W=20, C_out=64, KH=3, KW=3,
             stride=(1, 1), padding=(1, 1), dilation=(1, 1))
    # Wide C_out: exercises the C_out grid axis (two 256-wide tiles).
    run_case(k3, N=1, C_in=128, H=8, W=8, C_out=512, KH=3, KW=3,
             stride=(1, 1), padding=(1, 1), dilation=(1, 1))

    print("KERNEL_OK")
</pallas_src>

<mosaic_0001>
module attributes {stable_mosaic.version = 11 : i64} {
  func.func @_qconv_kernel(%arg0: i32, %arg1: i32, %arg2: i32, %arg3: memref<1xf32, #tpu.memory_space<smem>>, %arg4: memref<1xf32, #tpu.memory_space<smem>>, %arg5: memref<1x8x32x128xbf16, #tpu.memory_space<vmem>>, %arg6: memref<1x128x128xi8, #tpu.memory_space<vmem>>, %arg7: memref<1x128xf32, #tpu.memory_space<vmem>>, %arg8: memref<1x256x128xf32, #tpu.memory_space<vmem>>) attributes {dimension_semantics = [#tpu.dimension_semantics<parallel>, #tpu.dimension_semantics<parallel>, #tpu.dimension_semantics<parallel>], iteration_bounds = array<i64: 2, 4, 1>, scalar_prefetch = 0 : i64, scratch_operands = 0 : i64, tpu.core_type = #tpu.core_type<tc>, window_params = [{transform_indices = @transform_0, window_bounds = array<i64: 1>}, {transform_indices = @transform_1, window_bounds = array<i64: 1>}, {transform_indices = @transform_2, window_bounds = array<i64: 1, 8, 32, 128>}, {transform_indices = @transform_3, window_bounds = array<i64: 1, 128, 128>}, {transform_indices = @transform_4, window_bounds = array<i64: 1, 128>}, {transform_indices = @transform_5, window_bounds = array<i64: 1, 256, 128>}]} {
    %c0 = arith.constant 0 : index
    %0 = memref.load %arg3[%c0] : memref<1xf32, #tpu.memory_space<smem>>
    %c0_0 = arith.constant 0 : index
    %1 = memref.load %arg4[%c0_0] : memref<1xf32, #tpu.memory_space<smem>>
    %cst = arith.constant 0.000000e+00 : f32
    %2 = vector.broadcast %cst : f32 to vector<256x128xf32>
    %c0_1 = arith.constant 0 : index
    %c0_2 = arith.constant 0 : index
    %c0_3 = arith.constant 0 : index
    %c0_4 = arith.constant 0 : index
    %3 = vector.load %arg5[%c0_1, %c0_2, %c0_3, %c0_4] : memref<1x8x32x128xbf16, #tpu.memory_space<vmem>>, vector<1x8x32x128xbf16>
    %4 = vector.shape_cast %3 : vector<1x8x32x128xbf16> to vector<8x32x128xbf16>
    %5 = vector.shape_cast %4 : vector<8x32x128xbf16> to vector<256x128xbf16>
    %c0_5 = arith.constant 0 : index
    %c0_6 = arith.constant 0 : index
    %c0_7 = arith.constant 0 : index
    %6 = vector.load %arg6[%c0_5, %c0_6, %c0_7] : memref<1x128x128xi8, #tpu.memory_space<vmem>>, vector<1x128x128xi8>
    %7 = vector.shape_cast %6 : vector<1x128x128xi8> to vector<128x128xi8>
    %8 = arith.sitofp %7 : vector<128x128xi8> to vector<128x128xf32>
    %9 = vector.broadcast %1 : f32 to vector<128x128xf32>
    %10 = arith.subf %8, %9 : vector<128x128xf32>
    %11 = vector.broadcast %0 : f32 to vector<128x128xf32>
    %12 = arith.mulf %10, %11 : vector<128x128xf32>
    %13 = arith.truncf %12 : vector<128x128xf32> to vector<128x128xbf16>
    %cst_8 = arith.constant dense<0.000000e+00> : vector<256x128xf32>
    %14 = tpu.matmul %5, %13, %cst_8 {dimension_numbers = #tpu.dot_dimension_numbers<[1], [0], [0], [1], [0, 0, 1, 1], [], []>} : vector<256x128xbf16>, vector<128x128xbf16>, vector<256x128xf32> -> vector<256x128xf32>
    %15 = arith.addf %2, %14 : vector<256x128xf32>
    %c0_9 = arith.constant 0 : index
    %c0_10 = arith.constant 0 : index
    %16 = vector.load %arg7[%c0_9, %c0_10] : memref<1x128xf32, #tpu.memory_space<vmem>>, vector<1x128xf32>
    %17 = vector.broadcast %16 : vector<1x128xf32> to vector<256x128xf32>
    %18 = arith.addf %15, %17 : vector<256x128xf32>
    %c0_11 = arith.constant 0 : index
    %c0_12 = arith.constant 0 : index
    %c0_13 = arith.constant 0 : index
    %19 = vector.load %arg8[%c0_11, %c0_12, %c0_13] : memref<1x256x128xf32, #tpu.memory_space<vmem>>, vector<1x256x128xf32>
    %20 = vector.shape_cast %19 : vector<1x256x128xf32> to vector<256x128xf32>
    %21 = vector.shape_cast %18 : vector<256x128xf32> to vector<1x256x128xf32>
    tpu.vector_store %arg8[%c0_11, %c0_12, %c0_13], %21 {strides = array<i32>} : memref<1x256x128xf32, #tpu.memory_space<vmem>>, vector<1x256x128xf32>,
    return
  }
  func.func @transform_0(%arg0: i32, %arg1: i32, %arg2: i32) -> i32 {
    %c0_i32 = arith.constant 0 : i32
    %c0_i32_0 = arith.constant 0 : i32
    return %c0_i32 : i32
  }
  func.func @transform_1(%arg0: i32, %arg1: i32, %arg2: i32) -> i32 {
    %c0_i32 = arith.constant 0 : i32
    %c0_i32_0 = arith.constant 0 : i32
    return %c0_i32 : i32
  }
  func.func @transform_2(%arg0: i32, %arg1: i32, %arg2: i32) -> (i32, i32, i32, i32) {
    %c4_i32 = arith.constant 4 : i32
    %0 = arith.muli %arg0, %c4_i32 : i32
    %1 = arith.addi %0, %arg1 : i32
    %c0_i32 = arith.constant 0 : i32
    %c0_i32_0 = arith.constant 0 : i32
    %c0_i32_1 = arith.constant 0 : i32
    %c0_i32_2 = arith.constant 0 : i32
    return %1, %c0_i32, %c0_i32_0, %c0_i32_1 : i32, i32, i32, i32
  }
  func.func @transform_3(%arg0: i32, %arg1: i32, %arg2: i32) -> (i32, i32, i32) {
    %c0_i32 = arith.constant 0 : i32
    %c0_i32_0 = arith.constant 0 : i32
    %c0_i32_1 = arith.constant 0 : i32
    return %c0_i32, %c0_i32_0, %arg2 : i32, i32, i32
  }
  func.func @transform_4(%arg0: i32, %arg1: i32, %arg2: i32) -> (i32, i32) {
    %c0_i32 = arith.constant 0 : i32
    %c0_i32_0 = arith.constant 0 : i32
    return %c0_i32, %arg2 : i32, i32
  }
  func.func @transform_5(%arg0: i32, %arg1: i32, %arg2: i32) -> (i32, i32, i32) {
    %c0_i32 = arith.constant 0 : i32
    return %arg0, %arg1, %arg2 : i32, i32, i32
  }
}

</mosaic_0001>

<bundles_post_ra>
// kernel: quantized_conv2d.1
= control target key start
LH: loop header
LB: loop body
LE: loop exit
PB: predicated region body
PF: predicated region fallthrough
CT: control target
= control target key end

     0   :  { %s1098_s22 = smov 0   ;;  %s1100_s23 = smov 0   ;;  %s1295_s0 = inlined_call_operand.<no memory space> [shape: f32[1], index: 0, kind: input, shape index: {}]   ;;  %s1296_s1 = inlined_call_operand.<no memory space> [shape: f32[1], index: 1, kind: input, shape index: {}]   ;;  %s1297_s2 = inlined_call_operand.vmem [shape: bf16[8,8,32,128], index: 2, kind: input, shape index: {}]   ;;  %s1298_s3 = inlined_call_operand.vmem [shape: s8[1,128,128], index: 3, kind: input, shape index: {}]   ;;  %s1299_s4 = inlined_call_operand.vmem [shape: f32[1,128], index: 4, kind: input, shape index: {}]   ;;  %s1300_s5 = inlined_call_operand.vmem [shape: f32[2,1024,128], index: 5, kind: output, shape index: {}]  }
   0x1   :  { %10 = sst [smem:[#allocation2]] %s1295_s0  ;;  %s1102_s24 = smov 0  }
   0x2   :  { %11 = sst [smem:[#allocation3]] %s1296_s1  ;;  %s1104_s25 = smov 0  }
   0x3   :  { %s1106_s26 = smov 0  }
   0x4 LB: > { %s32_s0 = sadd.s32 1, %s1052_s24  ;;  %s36_s1 = sadd.s32 1, %s1056_s25  ;;  %s1060_s26 = sphi %s1106_s26, %s17_s26   ;;  %s1056_s25 = sphi %s1104_s25, %s1304_s25   ;;  %s1052_s24 = sphi %s1102_s24, %s1303_s24   ;;  %s1048_s23 = sphi %s1100_s23, %s1302_s23   ;;  %s1044_s22 = sphi %s1098_s22, %s1301_s22  }
   0x5   : > { %p34_p0 = scmp.ge.s32.totalorder %s32_s0, 4  ;;  %p851_p1 = scmp.ge.s32.totalorder %s1060_s26, 1 }
   0x6   : > { %p237_p2 = scmp.lt.s32.totalorder %s1060_s26, 9 }
   0x7   : > { %s1306_s0 = smov (%p34_p0, %s32_s0), 0  ;;  %s1308_s1 = smov (!%p34_p0, %s36_s1), %s1056_s25 }
   0x8   : > { %p238_p3 = pnand %p851_p1, %p237_p2  ;;  %p38_p4 = scmp.ge.s32.totalorder %s1308_s1, 2 }
   0x9   : > { %s311_s27 = sld [smem:[#allocation2]] (!%p238_p3)  ;;  %v345_v0 = vld [vmem:[%s1298_s3] sm:$0xff] (!%p238_p3)  ;;  %v346_v1 = vld [vmem:[%s1298_s3 + $0x8] sm:$0xff] (!%p238_p3)  ;;  %s852_s8 = sshll.u32 (!%p238_p3), %s1048_s23, 2  ;;  %v347_v14 = vld [vmem:[%s1298_s3 + $0x10] sm:$0xff] (!%p238_p3) }
   0xa   : > { %s1310_s1 = smov (%p38_p4, %s1308_s1), 0  ;;  %241 = sbr.rel (%p238_p3) target bundleno = 298 (0x12a), region = 40 }
   0xb   : > { %s312_s28 = sld [smem:[#allocation3]] (!%p238_p3)  ;;  %v349_v2 = vunpack.c.0.s8 (!%p238_p3), %v345_v0  ;;  %v350_v3 = vunpack.c.1.s8 (!%p238_p3), %v345_v0  ;;  %v351_v4 = vunpack.c.2.s8 (!%p238_p3), %v345_v0  ;;  %v352_v5 = vunpack.c.3.s8 (!%p238_p3), %v345_v0  ;;  %s282_s9 = sadd.s32 (!%p238_p3), %s1044_s22, %s852_s8  ;;  %v348_v45 = vld [vmem:[%s1298_s3 + $0x18] sm:$0xff] (!%p238_p3) }
   0xc   : > { %v353_v6 = vunpack.c.0.s8 (!%p238_p3), %v346_v1  ;;  %v354_v7 = vunpack.c.1.s8 (!%p238_p3), %v346_v1  ;;  %v355_v8 = vunpack.c.2.s8 (!%p238_p3), %v346_v1  ;;  %v356_v9 = vunpack.c.3.s8 (!%p238_p3), %v346_v1  ;;  %p283_p5 = scmp.lt.s32.totalorder (!%p238_p3), %s282_s9, 7  ;;  %s855_s18 = sshll.u32 (!%p238_p3), %s1044_s22, 5 }
   0xd   : > { %v365_v10 = vcvt.s32.f32 (!%p238_p3), %v349_v2  ;;  %v366_v11 = vcvt.s32.f32 (!%p238_p3), %v350_v3  ;;  %v367_v12 = vcvt.s32.f32 (!%p238_p3), %v351_v4  ;;  %v368_v13 = vcvt.s32.f32 (!%p238_p3), %v352_v5  ;;  %p298_p6 = scmp.lt.s32.totalorder (!%p238_p3), %s1048_s23, 1  ;;  %p300_p7 = scmp.lt.s32.totalorder (!%p238_p3), %s855_s18, 127 }
   0xe   : > { %v369_v15 = vcvt.s32.f32 (!%p238_p3), %v353_v6  ;;  %v370_v16 = vcvt.s32.f32 (!%p238_p3), %v354_v7  ;;  %v371_v17 = vcvt.s32.f32 (!%p238_p3), %v355_v8  ;;  %v372_v18 = vcvt.s32.f32 (!%p238_p3), %v356_v9 }
   0xf   : > { %v1145_v20 = vstv (!%p238_p3), %s311_s27  ;;  %v357_v21 = vunpack.c.0.s8 (!%p238_p3), %v347_v14  ;;  %v358_v22 = vunpack.c.1.s8 (!%p238_p3), %v347_v14  ;;  %v359_v38 = vunpack.c.2.s8 (!%p238_p3), %v347_v14 }
  0x10   : > { %v360_v39 = vunpack.c.3.s8 (!%p238_p3), %v347_v14  ;;  %v361_v50 = vunpack.c.0.s8 (!%p238_p3), %v348_v45  ;;  %v362_v51 = vunpack.c.1.s8 (!%p238_p3), %v348_v45  ;;  %v363_v62 = vunpack.c.2.s8 (!%p238_p3), %v348_v45 }
  0x11   : > { %s1312_s9 = smov (!%p283_p5, %s282_s9), 7  ;;  %v1143_v19 = vstv %s312_s28  ;;  %v373_v43 = vcvt.s32.f32 %v357_v21  ;;  %v374_v44 = vcvt.s32.f32 %v358_v22  ;;  %v375_v48 = vcvt.s32.f32 %v359_v38  ;;  %s1314_s23 = smov (!%p298_p6, %s1048_s23), 1 }
  0x12   : > { %v382_v23 = vsub.f32 %v365_v10, %v1143_v19  ;;  %v383_v24 = vsub.f32 %v366_v11, %v1143_v19  ;;  %v384_v25 = vsub.f32 %v367_v12, %v1143_v19  ;;  %v385_v26 = vsub.f32 %v368_v13, %v1143_v19  ;;  %s877_s12 = sshll.u32 %s1312_s9, 7  ;;  %s1316_s18 = smov (!%p300_p7, %s855_s18), 127 }
  0x13   : > { %v386_v27 = vsub.f32 %v369_v15, %v1143_v19  ;;  %v387_v28 = vsub.f32 %v370_v16, %v1143_v19  ;;  %v388_v29 = vsub.f32 %v371_v17, %v1143_v19  ;;  %v389_v30 = vsub.f32 %v372_v18, %v1143_v19  ;;  %s1158_s15 = scalar_lea.vmem %s1297_s2, %s877_s12  ;;  %s856_s19 = sshll.u32 %s1314_s23, 7 }
  0x14   : > { %v399_v31 = vmul.f32 %v1145_v20, %v382_v23  ;;  %v400_v32 = vmul.f32 %v1145_v20, %v383_v24  ;;  %v401_v33 = vmul.f32 %v1145_v20, %v384_v25  ;;  %v402_v34 = vmul.f32 %v1145_v20, %v385_v26  ;;  %v1006_v35 = vld [vmem:[%s1158_s15] sm:$0xff]   ;;  %v1008_v16 = vld [vmem:[%s1158_s15 + $0x8] sm:$0xff]   ;;  %v1010_v18 = vld [vmem:[%s1158_s15 + $0x10] sm:$0xff]   ;;  %s306_s20 = sadd.s32 %s856_s19, %s1316_s18 }
  0x15   : > { %v403_v36 = vmul.f32 %v1145_v20, %v386_v27  ;;  %v404_v37 = vmul.f32 %v1145_v20, %v387_v28  ;;  %v1007_v40 = vld [vmem:[%s1158_s15 + $0x40] sm:$0xff]   ;;  %918 = vmatprep.mubr.bf16.mxu0 %v1006_v35  ;;  %v405_v46 = vmul.f32 %v1145_v20, %v388_v29  ;;  %v406_v47 = vmul.f32 %v1145_v20, %v389_v30  ;;  %v1009_v17 = vld [vmem:[%s1158_s15 + $0x48] sm:$0xff]   ;;  %v1013_v21 = vld [vmem:[%s1158_s15 + $0x58] sm:$0xff]   ;;  %s857_s21 = sshll.u32 %s306_s20, 3 }
  0x16   : > { %v415_v41 = vpack.c.bf16 %v400_v32, %v399_v31  ;;  %v416_v42 = vpack.c.bf16 %v402_v34, %v401_v33  ;;  %934 = vmatprep.mubr.bf16.mxu1 %v1007_v40  ;;  %v376_v49 = vcvt.s32.f32 %v360_v39  ;;  %v390_v53 = vsub.f32 %v373_v43, %v1143_v19  ;;  %v1014_v22 = vld [vmem:[%s1158_s15 + $0x20] sm:$0xff]   ;;  %v1016_v24 = vld [vmem:[%s1158_s15 + $0x28] sm:$0xff]   ;;  %v1018_v26 = vld [vmem:[%s1158_s15 + $0x30] sm:$0xff]   ;;  %s1214_s6 = scalar_lea.vmem %s1300_s5, %s857_s21 }
  0x17   : > { %v417_v52 = vpack.c.bf16 %v404_v37, %v403_v36  ;;  %v391_v54 = vsub.f32 %v374_v44, %v1143_v19  ;;  %v418_v55 = vpack.c.bf16 %v406_v47, %v405_v46  ;;  %v392_v56 = vsub.f32 %v375_v48, %v1143_v19  ;;  %v1015_v23 = vld [vmem:[%s1158_s15 + $0x60] sm:$0xff]   ;;  %v1017_v25 = vld [vmem:[%s1158_s15 + $0x68] sm:$0xff]   ;;  %v1019_v27 = vld [vmem:[%s1158_s15 + $0x70] sm:$0xff]  }
  0x18   : > { %902 = vmatprep.subr.bf16.mxu0 %v415_v41  ;;  %950 = vmatprep.subr.bf16.mxu1 %v415_v41  ;;  %v393_v57 = vsub.f32 %v376_v49, %v1143_v19  ;;  %v377_v58 = vcvt.s32.f32 %v361_v50  ;;  %v378_v59 = vcvt.s32.f32 %v362_v51  ;;  %v407_v60 = vmul.f32 %v1145_v20, %v390_v53  ;;  %v1020_v28 = vld [vmem:[%s1158_s15 + $0x38] sm:$0xff]   ;;  %v1209_v30 = vld [vmem:[%s1299_s4] ss:$0 sm:$0xff] }
  0x19   : > { %903 = vmatpush3.bf16.msra.mxu0 %v415_v41  ;;  %958 = vmatpush3.bf16.msra.mxu1 %v415_v41  ;;  %v408_v61 = vmul.f32 %v1145_v20, %v391_v54  ;;  %v364_v63 = vunpack.c.3.s8 %v348_v45  ;;  %v409_v0 = vmul.f32 %v1145_v20, %v392_v56  ;;  %v379_v5 = vcvt.s32.f32 %v363_v62  ;;  %v1021_v29 = vld [vmem:[%s1158_s15 + $0x78] sm:$0xff]  }
  0x1a   : > { %904 = vmatprep.subr.bf16.mxu0 %v416_v42  ;;  %951 = vmatprep.subr.bf16.mxu1 %v416_v42  ;;  %v410_v1 = vmul.f32 %v1145_v20, %v393_v57  ;;  %v394_v2 = vsub.f32 %v377_v58, %v1143_v19  ;;  %v395_v4 = vsub.f32 %v378_v59, %v1143_v19 }
  0x1b   : > { %v419_v3 = vpack.c.bf16 %v408_v61, %v407_v60  ;;  %v380_v6 = vcvt.s32.f32 %v364_v63  ;;  %v396_v10 = vsub.f32 %v379_v5, %v1143_v19 }
  0x1c   : > { %v420_v7 = vpack.c.bf16 %v410_v1, %v409_v0  ;;  %v411_v8 = vmul.f32 %v1145_v20, %v394_v2  ;;  %v412_v9 = vmul.f32 %v1145_v20, %v395_v4 }
  0x1d   : > { %905 = vmatpush3.bf16.msra.mxu0 %v416_v42  ;;  %959 = vmatpush3.bf16.msra.mxu1 %v416_v42  ;;  %v397_v11 = vsub.f32 %v380_v6, %v1143_v19  ;;  %v413_v13 = vmul.f32 %v1145_v20, %v396_v10  ;;  %v1011_v19 = vld [vmem:[%s1158_s15 + $0x50] sm:$0xff]  }
  0x1e   : > { %906 = vmatprep.subr.bf16.mxu0 %v417_v52  ;;  %952 = vmatprep.subr.bf16.mxu1 %v417_v52  ;;  %v421_v12 = vpack.c.bf16 %v412_v9, %v411_v8 }
  0x1f   : > { %v414_v14 = vmul.f32 %v1145_v20, %v397_v11  ;;  %v1012_v20 = vld [vmem:[%s1158_s15 + $0x18] sm:$0xff]  }
  0x21   : > { %907 = vmatpush3.bf16.msra.mxu0 %v417_v52  ;;  %960 = vmatpush3.bf16.msra.mxu1 %v417_v52  ;;  %v422_v15 = vpack.c.bf16 %v414_v14, %v413_v13 }
  0x22   : > { %908 = vmatprep.subr.bf16.mxu0 %v418_v55  ;;  %953 = vmatprep.subr.bf16.mxu1 %v418_v55 }
  0x25   : > { %909 = vmatpush3.bf16.msra.mxu0 %v418_v55  ;;  %961 = vmatpush3.bf16.msra.mxu1 %v418_v55 }
  0x26   : > { %910 = vmatprep.subr.bf16.mxu0 %v419_v3  ;;  %954 = vmatprep.subr.bf16.mxu1 %v419_v3 }
  0x29   : > { %911 = vmatpush3.bf16.msra.mxu0 %v419_v3  ;;  %962 = vmatpush3.bf16.msra.mxu1 %v419_v3 }
  0x2a   : > { %912 = vmatprep.subr.bf16.mxu0 %v420_v7  ;;  %955 = vmatprep.subr.bf16.mxu1 %v420_v7 }
  0x2d   : > { %913 = vmatpush3.bf16.msra.mxu0 %v420_v7  ;;  %963 = vmatpush3.bf16.msra.mxu1 %v420_v7 }
  0x2e   : > { %914 = vmatprep.subr.bf16.mxu0 %v421_v12  ;;  %956 = vmatprep.subr.bf16.mxu1 %v421_v12 }
  0x31   : > { %915 = vmatpush3.bf16.msra.mxu0 %v421_v12  ;;  %964 = vmatpush3.bf16.msra.mxu1 %v421_v12 }
  0x32   : > { %916 = vmatprep.subr.bf16.mxu0 %v422_v15  ;;  %957 = vmatprep.subr.bf16.mxu1 %v422_v15 }
  0x35   : > { %917 = vmatpush3.bf16.msra.mxu0 %v422_v15  ;;  %965 = vmatpush3.bf16.msra.mxu1 %v422_v15 }
  0x38   : > { %919 = vmatmul.mubr.bf16.vlgmr.msra.gmra.mrb[0].mxu0 %v1008_v16  ;;  %935 = vmatmul.mubr.bf16.vlgmr.msra.gmra.mrb[0].mxu1 %v1009_v17 }
  0x39   : > { %922 = vmatprep.mubr.bf16.mxu0 %v1010_v18  ;;  %938 = vmatprep.mubr.bf16.mxu1 %v1011_v19 }
  0x40   : > { %923 = vmatmul.mubr.bf16.gmra.mrb[4].mxu0 %v1012_v20  ;;  %939 = vmatmul.mubr.bf16.gmra.mrb[4].mxu1 %v1013_v21 }
  0x41   : > { %926 = vmatprep.mubr.bf16.mxu0 %v1014_v22  ;;  %942 = vmatprep.mubr.bf16.mxu1 %v1015_v23 }
  0x48   : > { %927 = vmatmul.mubr.bf16.gmra.mrb[8].mxu0 %v1016_v24  ;;  %943 = vmatmul.mubr.bf16.gmra.mrb[8].mxu1 %v1017_v25 }
  0x49   : > { %930 = vmatprep.mubr.bf16.mxu0 %v1018_v26  ;;  %946 = vmatprep.mubr.bf16.mxu1 %v1019_v27 }
  0x50   : > { %931 = vmatmul.mubr.bf16.gmra.mrb[12].mxu0 %v1020_v28  ;;  %947 = vmatmul.mubr.bf16.gmra.mrb[12].mxu1 %v1021_v29 }
 0x10b   : > { %v920_v31 = vpop.f32.mrb[0].mxu0  ;;  %v936_v32 = vpop.f32.mrb[0].mxu1 }
 0x10c   : > { %v569_v33 = vadd.f32 %v920_v31, %v1209_v30  ;;  %v633_v34 = vadd.f32 %v936_v32, %v1209_v30  ;;  %v560_v35 = vpop.f32.mrb[1].mxu0  ;;  %v624_v36 = vpop.f32.mrb[1].mxu1 }
 0x10d   : > { %v561_v37 = vadd.f32 %v1209_v30, %v560_v35  ;;  %v625_v38 = vadd.f32 %v1209_v30, %v624_v36  ;;  %v921_v39 = vpop.f32.mrb[2].mxu0  ;;  %v937_v40 = vpop.f32.mrb[2].mxu1 }
 0x10e   : > { %689 = vst [vmem:[%s1214_s6 + $0x10] sm:$0xff] %v569_v33  ;;  %705 = vst [vmem:[%s1214_s6 + $0x90] sm:$0xff] %v633_v34  ;;  %v572_v41 = vadd.f32 %v921_v39, %v1209_v30  ;;  %v636_v42 = vadd.f32 %v937_v40, %v1209_v30  ;;  %v563_v43 = vpop.f32.mrb[3].mxu0  ;;  %v627_v44 = vpop.f32.mrb[3].mxu1 }
 0x10f   : > { %687 = vst [vmem:[%s1214_s6] sm:$0xff] %v561_v37  ;;  %703 = vst [vmem:[%s1214_s6 + $0x80] sm:$0xff] %v625_v38  ;;  %v564_v45 = vadd.f32 %v1209_v30, %v563_v43  ;;  %v628_v46 = vadd.f32 %v1209_v30, %v627_v44 }
 0x110   : > { %690 = vst [vmem:[%s1214_s6 + $0x18] sm:$0xff] %v572_v41  ;;  %706 = vst [vmem:[%s1214_s6 + $0x98] sm:$0xff] %v636_v42 }
 0x111   : > { %688 = vst [vmem:[%s1214_s6 + $0x8] sm:$0xff] %v564_v45  ;;  %704 = vst [vmem:[%s1214_s6 + $0x88] sm:$0xff] %v628_v46 }
 0x113   : > { %v924_v47 = vpop.f32.mrb[4].mxu0  ;;  %v940_v48 = vpop.f32.mrb[4].mxu1 }
 0x114   : > { %v585_v49 = vadd.f32 %v924_v47, %v1209_v30  ;;  %v649_v50 = vadd.f32 %v940_v48, %v1209_v30  ;;  %v576_v51 = vpop.f32.mrb[5].mxu0  ;;  %v640_v52 = vpop.f32.mrb[5].mxu1 }
 0x115   : > { %v577_v53 = vadd.f32 %v1209_v30, %v576_v51  ;;  %v641_v54 = vadd.f32 %v1209_v30, %v640_v52  ;;  %v925_v55 = vpop.f32.mrb[6].mxu0  ;;  %v941_v56 = vpop.f32.mrb[6].mxu1 }
 0x116   : > { %693 = vst [vmem:[%s1214_s6 + $0x30] sm:$0xff] %v585_v49  ;;  %709 = vst [vmem:[%s1214_s6 + $0xb0] sm:$0xff] %v649_v50  ;;  %v588_v57 = vadd.f32 %v925_v55, %v1209_v30  ;;  %v652_v58 = vadd.f32 %v941_v56, %v1209_v30  ;;  %v579_v59 = vpop.f32.mrb[7].mxu0  ;;  %v643_v60 = vpop.f32.mrb[7].mxu1 }
 0x117   : > { %691 = vst [vmem:[%s1214_s6 + $0x20] sm:$0xff] %v577_v53  ;;  %707 = vst [vmem:[%s1214_s6 + $0xa0] sm:$0xff] %v641_v54  ;;  %v580_v61 = vadd.f32 %v1209_v30, %v579_v59  ;;  %v644_v62 = vadd.f32 %v1209_v30, %v643_v60 }
 0x118   : > { %694 = vst [vmem:[%s1214_s6 + $0x38] sm:$0xff] %v588_v57  ;;  %710 = vst [vmem:[%s1214_s6 + $0xb8] sm:$0xff] %v652_v58 }
 0x119   : > { %692 = vst [vmem:[%s1214_s6 + $0x28] sm:$0xff] %v580_v61  ;;  %708 = vst [vmem:[%s1214_s6 + $0xa8] sm:$0xff] %v644_v62 }
 0x11b   : > { %v928_v63 = vpop.f32.mrb[8].mxu0  ;;  %v944_v0 = vpop.f32.mrb[8].mxu1 }
 0x11c   : > { %v601_v1 = vadd.f32 %v928_v63, %v1209_v30  ;;  %v665_v2 = vadd.f32 %v944_v0, %v1209_v30  ;;  %v592_v3 = vpop.f32.mrb[9].mxu0  ;;  %v656_v4 = vpop.f32.mrb[9].mxu1 }
 0x11d   : > { %v593_v5 = vadd.f32 %v1209_v30, %v592_v3  ;;  %v657_v6 = vadd.f32 %v1209_v30, %v656_v4  ;;  %v929_v7 = vpop.f32.mrb[10].mxu0  ;;  %v945_v8 = vpop.f32.mrb[10].mxu1 }
 0x11e   : > { %697 = vst [vmem:[%s1214_s6 + $0x50] sm:$0xff] %v601_v1  ;;  %713 = vst [vmem:[%s1214_s6 + $0xd0] sm:$0xff] %v665_v2  ;;  %v604_v9 = vadd.f32 %v929_v7, %v1209_v30  ;;  %v668_v10 = vadd.f32 %v945_v8, %v1209_v30  ;;  %v595_v11 = vpop.f32.mrb[11].mxu0  ;;  %v659_v12 = vpop.f32.mrb[11].mxu1 }
 0x11f   : > { %695 = vst [vmem:[%s1214_s6 + $0x40] sm:$0xff] %v593_v5  ;;  %711 = vst [vmem:[%s1214_s6 + $0xc0] sm:$0xff] %v657_v6  ;;  %v596_v13 = vadd.f32 %v1209_v30, %v595_v11  ;;  %v660_v14 = vadd.f32 %v1209_v30, %v659_v12 }
 0x120   : > { %698 = vst [vmem:[%s1214_s6 + $0x58] sm:$0xff] %v604_v9  ;;  %714 = vst [vmem:[%s1214_s6 + $0xd8] sm:$0xff] %v668_v10 }
 0x121   : > { %696 = vst [vmem:[%s1214_s6 + $0x48] sm:$0xff] %v596_v13  ;;  %712 = vst [vmem:[%s1214_s6 + $0xc8] sm:$0xff] %v660_v14 }
 0x123   : > { %v932_v15 = vpop.f32.mrb[12].mxu0  ;;  %v948_v16 = vpop.f32.mrb[12].mxu1 }
 0x124   : > { %v617_v17 = vadd.f32 %v932_v15, %v1209_v30  ;;  %v681_v18 = vadd.f32 %v948_v16, %v1209_v30  ;;  %v608_v19 = vpop.f32.mrb[13].mxu0  ;;  %v672_v20 = vpop.f32.mrb[13].mxu1 }
 0x125   : > { %v609_v21 = vadd.f32 %v1209_v30, %v608_v19  ;;  %v673_v22 = vadd.f32 %v1209_v30, %v672_v20  ;;  %v933_v23 = vpop.f32.mrb[14].mxu0  ;;  %v949_v24 = vpop.f32.mrb[14].mxu1 }
 0x126   : > { %701 = vst [vmem:[%s1214_s6 + $0x70] sm:$0xff] %v617_v17  ;;  %717 = vst [vmem:[%s1214_s6 + $0xf0] sm:$0xff] %v681_v18  ;;  %v620_v25 = vadd.f32 %v933_v23, %v1209_v30  ;;  %v684_v26 = vadd.f32 %v949_v24, %v1209_v30  ;;  %v611_v27 = vpop.f32.mrb[15].mxu0  ;;  %v675_v28 = vpop.f32.mrb[15].mxu1 }
 0x127   : > { %699 = vst [vmem:[%s1214_s6 + $0x60] sm:$0xff] %v609_v21  ;;  %715 = vst [vmem:[%s1214_s6 + $0xe0] sm:$0xff] %v673_v22  ;;  %v612_v29 = vadd.f32 %v1209_v30, %v611_v27  ;;  %v676_v31 = vadd.f32 %v1209_v30, %v675_v28 }
 0x128   : > { %702 = vst [vmem:[%s1214_s6 + $0x78] sm:$0xff] %v620_v25  ;;  %718 = vst [vmem:[%s1214_s6 + $0xf8] sm:$0xff] %v684_v26 }
 0x129   : > { %700 = vst [vmem:[%s1214_s6 + $0x68] sm:$0xff] %v612_v29  ;;  %716 = vst [vmem:[%s1214_s6 + $0xe8] sm:$0xff] %v676_v31 }
 0x12a PF: > { %s17_s26 = sadd.s32 1, %s1060_s26   ;;  %s1301_s22 = smov %s1052_s24 }
 0x12b   : > { %p14_p8 = scmp.ge.s32.totalorder %s17_s26, 10   ;;  %s1302_s23 = smov %s1056_s25 }
 0x12c   : > { %s1303_s24 = smov %s1306_s0  ;;  %s1304_s25 = smov %s1310_s1 }
 0x12d   :  { %16 = sbr.rel (!%p14_p8) target bundleno = 4 (0x4), region = 76 }

</bundles_post_ra>
